<compile_context>
chip_gen: v7x
topology: tpu7x:2x2x1
jax: 0.10.0
libtpu: 0.0.40
codegen_flags: <defaults>
</compile_context>

<pallas_src>
import functools

import jax
import jax.numpy as jnp
from jax.experimental import pallas as pl
from jax.experimental.pallas import tpu as pltpu

_LANE = 128
_SUBLANE = 8


def _weighted_loss_kernel(o_ref, t_ref, m_ref, out_ref, acc_ref, *, weight_factor):
    """Accumulate sum(d^2 * ((1-m)^2 + wf*m^2)) into an (8,128) vector acc."""
    i = pl.program_id(1)

    @pl.when(i == 0)
    def _():
        acc_ref[...] = jnp.zeros_like(acc_ref)

    d = o_ref[...].astype(jnp.float32) - t_ref[...].astype(jnp.float32)
    m = m_ref[...].astype(jnp.float32)

    # Fused per-element weight: (1-m)^2 + wf*m^2. Summed over all elements and
    # divided by N this equals term0 + wf*term1 of the PyTorch reference.
    one_minus_m = 1.0 - m
    w = one_minus_m * one_minus_m + jnp.float32(weight_factor) * (m * m)
    contrib = (d * d) * w                                     # (tm, 128) f32

    tm = contrib.shape[0]
    # Reduce only across sublane-blocks (pure VPU adds, layout-preserving
    # reshape); the expensive cross-lane/XLU reduce is deferred to the wrapper.
    acc_ref[...] += jnp.sum(
        contrib.reshape(tm // _SUBLANE, _SUBLANE, _LANE), axis=0)

    @pl.when(i == pl.num_programs(1) - 1)
    def _():
        out_ref[...] = acc_ref[...][None, :, :]


def _round_up(x, m):
    return ((x + m - 1) // m) * m


def weighted_loss(output, target, mask, weight_factor=0.8, *,
                  max_block_rows=2048, mask_dtype=jnp.bfloat16):
    assert output.shape == target.shape == mask.shape
    n_elements = output.size

    # Narrow mask dtype cuts HBM traffic ~25%; exact for binary 0/1 masks
    # (which is what this training loss uses). Pass mask_dtype=None to keep
    # the original dtype for non-binary masks.
    if mask_dtype is not None:
        mask = mask.astype(mask_dtype)

    rows_needed = (n_elements + _LANE - 1) // _LANE

    if rows_needed <= max_block_rows:
        # Small input: a single block, no pipelining machinery.
        tm = max(_SUBLANE, _round_up(rows_needed, _SUBLANE))
        num_shards, tiles_per_shard = 1, 1
    else:
        tm = max_block_rows                       # 2048 rows -> ~5 MiB/step
        num_shards = 2                            # v7x megacore; serial on v5e/v6e
        tiles_total = _round_up((rows_needed + tm - 1) // tm, num_shards)
        tiles_per_shard = tiles_total // num_shards

    rows_padded = num_shards * tiles_per_shard * tm
    padded_n = rows_padded * _LANE

    def _prep(x):
        flat = x.reshape(-1)
        if padded_n != n_elements:
            # Zero padding: padded diffs are 0, so they contribute nothing.
            flat = jnp.pad(flat, (0, padded_n - n_elements))
        return flat.reshape(rows_padded, _LANE)

    o2, t2, m2 = _prep(output), _prep(target), _prep(mask)

    # Scoped VMEM: 3 inputs x double-buffered tiles (+ headroom), capped so
    # large tiles are never rejected but we stay safe on v7x's 64 MiB VMEM.
    bytes_per_row = _LANE * (o2.dtype.itemsize + t2.dtype.itemsize + m2.dtype.itemsize)
    vmem_needed = 2 * tm * bytes_per_row + (1 << 20)
    vmem_limit = int(min(max(vmem_needed, 16 << 20), 48 << 20))

    kernel = functools.partial(_weighted_loss_kernel,
                               weight_factor=float(weight_factor))
    in_map = lambda s, i: (s * tiles_per_shard + i, 0)

    partials = pl.pallas_call(
        kernel,
        out_shape=jax.ShapeDtypeStruct((num_shards, _SUBLANE, _LANE), jnp.float32),
        grid_spec=pltpu.PrefetchScalarGridSpec(
            num_scalar_prefetch=0,
            grid=(num_shards, tiles_per_shard),
            in_specs=[
                pl.BlockSpec((tm, _LANE), in_map),
                pl.BlockSpec((tm, _LANE), in_map),
                pl.BlockSpec((tm, _LANE), in_map),
            ],
            out_specs=pl.BlockSpec((1, _SUBLANE, _LANE), lambda s, i: (s, 0, 0)),
            scratch_shapes=[pltpu.VMEM((_SUBLANE, _LANE), jnp.float32)],
        ),
        compiler_params=pltpu.CompilerParams(
            dimension_semantics=("parallel", "arbitrary"),
            vmem_limit_bytes=vmem_limit,
        ),
    )(o2, t2, m2)

    # Tiny final reduce (num_shards * 8 * 128 elements) + mean normalization.
    return jnp.sum(partials) / jnp.float32(n_elements)


def weighted_loss_ref(output, target, mask, weight_factor=0.8):
    d = output - target
    term0 = jnp.mean((d * (1.0 - mask)) ** 2)
    term1 = jnp.mean((d * mask) ** 2)
    return term0 + weight_factor * term1


if __name__ == "__main__":
    key = jax.random.PRNGKey(0)
    k1, k2, k3 = jax.random.split(key, 3)

    # Small NCHW-shaped inputs: batch=2, channels=4, spatial=16x16.
    shape = (2, 4, 16, 16)
    output = jax.random.normal(k1, shape, dtype=jnp.float32)
    target = jax.random.normal(k2, shape, dtype=jnp.float32)
    mask = (jax.random.uniform(k3, shape) > 0.5).astype(jnp.float32)

    loss = weighted_loss(output, target, mask, weight_factor=0.8)
    loss = jax.block_until_ready(loss)
    ref = weighted_loss_ref(output, target, mask, weight_factor=0.8)
    assert jnp.allclose(loss, ref, rtol=1e-5, atol=1e-6), (loss, ref)

    # Also exercise the non-multiple-of-128 padding path with a tiny shape.
    shape2 = (2, 3, 7, 11)
    o2 = jax.random.normal(k1, shape2, dtype=jnp.float32)
    t2 = jax.random.normal(k2, shape2, dtype=jnp.float32)
    m2 = (jax.random.uniform(k3, shape2) > 0.5).astype(jnp.float32)
    loss2 = jax.block_until_ready(weighted_loss(o2, t2, m2, weight_factor=0.8))
    ref2 = weighted_loss_ref(o2, t2, m2, weight_factor=0.8)
    assert jnp.allclose(loss2, ref2, rtol=1e-5, atol=1e-6), (loss2, ref2)

    print("KERNEL_OK")
</pallas_src>

<mosaic_0001>
module attributes {stable_mosaic.version = 11 : i64} {
  func.func @_weighted_loss_kernel(%arg0: i32, %arg1: i32, %arg2: memref<16x128xf32, #tpu.memory_space<vmem>>, %arg3: memref<16x128xf32, #tpu.memory_space<vmem>>, %arg4: memref<16x128xbf16, #tpu.memory_space<vmem>>, %arg5: memref<1x8x128xf32, #tpu.memory_space<vmem>>, %arg6: memref<8x128xf32, #tpu.memory_space<vmem>>) attributes {dimension_semantics = [#tpu.dimension_semantics<parallel>, #tpu.dimension_semantics<arbitrary>], iteration_bounds = array<i64: 1, 1>, scalar_prefetch = 0 : i64, scratch_operands = 1 : i64, tpu.core_type = #tpu.core_type<tc>, window_params = [{transform_indices = @transform_0, window_bounds = array<i64: 16, 128>}, {transform_indices = @transform_1, window_bounds = array<i64: 16, 128>}, {transform_indices = @transform_2, window_bounds = array<i64: 16, 128>}, {transform_indices = @transform_3, window_bounds = array<i64: 1, 8, 128>}]} {
    %c0_i32 = arith.constant 0 : i32
    %0 = arith.cmpi eq, %arg1, %c0_i32 : i32
    %1 = arith.extui %0 : i1 to i32
    %c0_i32_0 = arith.constant 0 : i32
    %2 = arith.cmpi ne, %1, %c0_i32_0 : i32
    scf.if %2 {
      %cst_14 = arith.constant 0.000000e+00 : f32
      %25 = vector.broadcast %cst_14 : f32 to vector<8x128xf32>
      %c0_15 = arith.constant 0 : index
      %c0_16 = arith.constant 0 : index
      %26 = vector.load %arg6[%c0_15, %c0_16] : memref<8x128xf32, #tpu.memory_space<vmem>>, vector<8x128xf32>
      tpu.vector_store %arg6[%c0_15, %c0_16], %25 {strides = array<i32>} : memref<8x128xf32, #tpu.memory_space<vmem>>, vector<8x128xf32>,
    } else {
    }
    %c0 = arith.constant 0 : index
    %c0_1 = arith.constant 0 : index
    %3 = vector.load %arg2[%c0, %c0_1] : memref<16x128xf32, #tpu.memory_space<vmem>>, vector<16x128xf32>
    %c0_2 = arith.constant 0 : index
    %c0_3 = arith.constant 0 : index
    %4 = vector.load %arg3[%c0_2, %c0_3] : memref<16x128xf32, #tpu.memory_space<vmem>>, vector<16x128xf32>
    %5 = arith.subf %3, %4 : vector<16x128xf32>
    %c0_4 = arith.constant 0 : index
    %c0_5 = arith.constant 0 : index
    %6 = vector.load %arg4[%c0_4, %c0_5] : memref<16x128xbf16, #tpu.memory_space<vmem>>, vector<16x128xbf16>
    %7 = arith.extf %6 : vector<16x128xbf16> to vector<16x128xf32>
    %cst = arith.constant 1.000000e+00 : f32
    %8 = vector.broadcast %cst : f32 to vector<16x128xf32>
    %9 = arith.subf %8, %7 : vector<16x128xf32>
    %10 = arith.mulf %9, %9 : vector<16x128xf32>
    %11 = arith.mulf %7, %7 : vector<16x128xf32>
    %cst_6 = arith.constant 8.000000e-01 : f32
    %12 = vector.broadcast %cst_6 : f32 to vector<16x128xf32>
    %13 = arith.mulf %12, %11 : vector<16x128xf32>
    %14 = arith.addf %10, %13 : vector<16x128xf32>
    %15 = arith.mulf %5, %5 : vector<16x128xf32>
    %16 = arith.mulf %15, %14 : vector<16x128xf32>
    %c0_7 = arith.constant 0 : index
    %c0_8 = arith.constant 0 : index
    %17 = vector.load %arg6[%c0_7, %c0_8] : memref<8x128xf32, #tpu.memory_space<vmem>>, vector<8x128xf32>
    %18 = vector.shape_cast %16 : vector<16x128xf32> to vector<2x8x128xf32>
    %cst_9 = arith.constant dense<0.000000e+00> : vector<8x128xf32>
    %19 = vector.multi_reduction <add>, %18, %cst_9 [0] : vector<2x8x128xf32> to vector<8x128xf32>
    %20 = arith.addf %17, %19 : vector<8x128xf32>
    %c0_10 = arith.constant 0 : index
    %c0_11 = arith.constant 0 : index
    %21 = vector.load %arg6[%c0_10, %c0_11] : memref<8x128xf32, #tpu.memory_space<vmem>>, vector<8x128xf32>
    tpu.vector_store %arg6[%c0_10, %c0_11], %20 {strides = array<i32>} : memref<8x128xf32, #tpu.memory_space<vmem>>, vector<8x128xf32>,
    %c0_i32_12 = arith.constant 0 : i32
    %22 = arith.cmpi eq, %arg1, %c0_i32_12 : i32
    %23 = arith.extui %22 : i1 to i32
    %c0_i32_13 = arith.constant 0 : i32
    %24 = arith.cmpi ne, %23, %c0_i32_13 : i32
    scf.if %24 {
      %c0_14 = arith.constant 0 : index
      %c0_15 = arith.constant 0 : index
      %25 = vector.load %arg6[%c0_14, %c0_15] : memref<8x128xf32, #tpu.memory_space<vmem>>, vector<8x128xf32>
      %26 = vector.shape_cast %25 : vector<8x128xf32> to vector<1x8x128xf32>
      %c0_16 = arith.constant 0 : index
      %c0_17 = arith.constant 0 : index
      %c0_18 = arith.constant 0 : index
      %27 = vector.load %arg5[%c0_16, %c0_17, %c0_18] : memref<1x8x128xf32, #tpu.memory_space<vmem>>, vector<1x8x128xf32>
      tpu.vector_store %arg5[%c0_16, %c0_17, %c0_18], %26 {strides = array<i32>} : memref<1x8x128xf32, #tpu.memory_space<vmem>>, vector<1x8x128xf32>,
    } else {
    }
    return
  }
  func.func @transform_0(%arg0: i32, %arg1: i32) -> (i32, i32) {
    %c1_i32 = arith.constant 1 : i32
    %0 = arith.muli %arg0, %c1_i32 : i32
    %1 = arith.addi %0, %arg1 : i32
    %c0_i32 = arith.constant 0 : i32
    %c0_i32_0 = arith.constant 0 : i32
    return %1, %c0_i32 : i32, i32
  }
  func.func @transform_1(%arg0: i32, %arg1: i32) -> (i32, i32) {
    %c1_i32 = arith.constant 1 : i32
    %0 = arith.muli %arg0, %c1_i32 : i32
    %1 = arith.addi %0, %arg1 : i32
    %c0_i32 = arith.constant 0 : i32
    %c0_i32_0 = arith.constant 0 : i32
    return %1, %c0_i32 : i32, i32
  }
  func.func @transform_2(%arg0: i32, %arg1: i32) -> (i32, i32) {
    %c1_i32 = arith.constant 1 : i32
    %0 = arith.muli %arg0, %c1_i32 : i32
    %1 = arith.addi %0, %arg1 : i32
    %c0_i32 = arith.constant 0 : i32
    %c0_i32_0 = arith.constant 0 : i32
    return %1, %c0_i32 : i32, i32
  }
  func.func @transform_3(%arg0: i32, %arg1: i32) -> (i32, i32, i32) {
    %c0_i32 = arith.constant 0 : i32
    %c0_i32_0 = arith.constant 0 : i32
    %c0_i32_1 = arith.constant 0 : i32
    return %arg0, %c0_i32, %c0_i32_0 : i32, i32, i32
  }
}

</mosaic_0001>

<bundles_post_ra>
// kernel: tpu_custom_call.1
= control target key start
LH: loop header
LB: loop body
LE: loop exit
PB: predicated region body
PF: predicated region fallthrough
CT: control target
= control target key end

     0   :  { %8 = vsyncpa [#allocation4], 0  ;;  %s317_s0 = inlined_call_operand.hbm [shape: f32[16,128], index: 0, kind: input, shape index: {}]   ;;  %s318_s1 = inlined_call_operand.hbm [shape: f32[16,128], index: 1, kind: input, shape index: {}]   ;;  %s319_s2 = inlined_call_operand.hbm [shape: bf16[16,128], index: 2, kind: input, shape index: {}]   ;;  %s320_s3 = inlined_call_operand.hbm [shape: f32[1,8,128], index: 3, kind: output, shape index: {}]  }
   0x1   :  { %9 = vsyncpa [#allocation7], 0 }
   0x2   :  { %10 = vsyncpa [#allocation5], 0  ;;  %s234_s12 = smov [#allocation6]   ;;  %s235_s14 = smov [#allocation3]  }
   0x3   :  { %s36_s13 = sshll.u32 %s234_s12, 4  ;;  %s20_s15 = sshll.u32 %s235_s14, 4  ;;  %s37_s13 = int_to_ptr.vmem [resolvable:$true] %s36_s13  ;;  %s262_s15 = int_to_ptr.vmem [resolvable:$true] %s20_s15 }
   0x4   :  { %s140_s18 = scalar_lea.hbm %s318_s1, 256 }
   0x5   :  { %p141_p0 = scmp.ne.s32.totalorder %s318_s1, %s140_s18  ;;  %p144_p1 = scmp.lt.u32.totalorder %s140_s18, %s318_s1 }
   0x7   :  { %p146_p2 = pnand %p144_p1, %p141_p0 }
   0x9   :  { %149 = shalt.err (!%p146_p2)
}
   0xa   :  { %s150_s23 = scalar_lea.vmem %s37_s13, 256  ;;  %p155_p4 = scmp.lt.s32.totalorder %s37_s13, %s37_s13 }
   0xb   :  { %p151_p3 = scmp.ne.s32.totalorder %s37_s13, %s150_s23  ;;  %p156_p5 = scmp.lt.s32.totalorder %s150_s23, %s150_s23 }
   0xd   :  { %p157_p6 = por %p156_p5, %p155_p4 }
   0xf   :  { %p158_p7 = pnand %p157_p6, %p151_p3 }
  0x11   :  { %161 = shalt.err (!%p158_p7)
}
  0x12   :  { %s236_s24 = smov 128   ;;  %s237_s25 = smov 8  }
  0x13   :  { %42 = dma.hbm_to_vmem [thread:$0]  %s318_s1, 256, %s37_s13, [#allocation7], %s236_s24, %s236_s24, %s237_s25  }
  0x14   :  { %s162_s30 = scalar_lea.hbm %s317_s0, 256 }
  0x15   :  { %p163_p8 = scmp.ne.s32.totalorder %s317_s0, %s162_s30  ;;  %p166_p9 = scmp.lt.u32.totalorder %s162_s30, %s317_s0 }
  0x17   :  { %p168_p10 = pnand %p166_p9, %p163_p8 }
  0x19   :  { %171 = shalt.err (!%p168_p10)
}
  0x1a   :  { %s172_s8 = scalar_lea.vmem %s262_s15, 256  ;;  %p177_p12 = scmp.lt.s32.totalorder %s262_s15, %s262_s15 }
  0x1b   :  { %p173_p11 = scmp.ne.s32.totalorder %s262_s15, %s172_s8  ;;  %p178_p13 = scmp.lt.s32.totalorder %s172_s8, %s172_s8 }
  0x1d   :  { %p179_p0 = por %p178_p13, %p177_p12 }
  0x1f   :  { %p180_p1 = pnand %p179_p0, %p173_p11 }
  0x21   :  { %183 = shalt.err (!%p180_p1)
}
  0x22   :  { %26 = dma.hbm_to_vmem [thread:$0]  %s317_s0, 256, %s262_s15, [#allocation4], %s236_s24, %s236_s24, %s237_s25  }
  0x23   :  { %s238_s10 = smov [#allocation8]   ;;  %s184_s14 = scalar_lea.hbm %s319_s2, 128 }
  0x24   :  { %s52_s11 = sshll.u32 %s238_s10, 4  ;;  %p185_p2 = scmp.ne.s32.totalorder %s319_s2, %s184_s14  ;;  %s53_s11 = int_to_ptr.vmem [resolvable:$true] %s52_s11 }
  0x25   :  { %p188_p3 = scmp.lt.u32.totalorder %s184_s14, %s319_s2 }
  0x27   :  { %p190_p4 = pnand %p188_p3, %p185_p2 }
  0x29   :  { %193 = shalt.err (!%p190_p4)
}
  0x2a   :  { %s194_s20 = scalar_lea.vmem %s53_s11, 128  ;;  %p199_p6 = scmp.lt.s32.totalorder %s53_s11, %s53_s11 }
  0x2b   :  { %p195_p5 = scmp.ne.s32.totalorder %s53_s11, %s194_s20  ;;  %p200_p7 = scmp.lt.s32.totalorder %s194_s20, %s194_s20 }
  0x2d   :  { %p201_p8 = por %p200_p7, %p199_p6 }
  0x2f   :  { %p202_p9 = pnand %p201_p8, %p195_p5 }
  0x31   :  { %205 = shalt.err (!%p202_p9)
}
  0x32   :  { %s239_s0 = smov 64   ;;  %s240_s15 = smov 4  }
  0x33   :  { %58 = dma.hbm_to_vmem [thread:$0]  %s319_s2, 128, %s53_s11, [#allocation7], %s239_s0, %s239_s0, %s240_s15  }
  0x34   :  { %228 = dma.done.wait [#allocation4], 256  }
  0x35   :  { %229 = vsyncadd [#allocation4], 4294967040 }
  0x36   :  { %230 = dma.done.wait [#allocation7], 384  }
  0x37   :  { %231 = vsyncadd [#allocation7], 4294966912  ;;  %v79_v0 = vld [vmem:[#allocation3] sm:$0xff]  ;;  %v80_v1 = vld [vmem:[#allocation3 + $0x8] sm:$0xff]  ;;  %s241_s2 = smov [#allocation9]  }
  0x38   :  { %v81_v2 = vld [vmem:[#allocation6] sm:$0xff]  ;;  %v82_v3 = vld [vmem:[#allocation6 + $0x8] sm:$0xff]  ;;  %v129_v5 = vld [vmem:[#allocation8] sm:$0xff]   ;;  %s118_s23 = sshll.u32 %s241_s2, 4  ;;  %s119_s23 = int_to_ptr.vmem [resolvable:$true] %s118_s23 }
  0x39   :  { %v83_v4 = vsub.f32 %v79_v0, %v81_v2  ;;  %v84_v6 = vsub.f32 %v80_v1, %v82_v3  ;;  %v130_v7 = vunpack.c.l.bf16 %v129_v5  ;;  %v131_v8 = vunpack.c.h.bf16 %v129_v5  ;;  %s206_s24 = scalar_lea.vmem %s119_s23, 128  ;;  %p211_p11 = scmp.lt.s32.totalorder %s119_s23, %s119_s23 }
  0x3a   :  { %p207_p10 = scmp.ne.s32.totalorder %s119_s23, %s206_s24  ;;  %p212_p12 = scmp.lt.s32.totalorder %s206_s24, %s206_s24 }
  0x3b   :  { %v89_v9 = vsub.f32 1.0, %v130_v7  ;;  %v90_v10 = vsub.f32 1.0, %v131_v8  ;;  %v93_v11 = vmul.f32 %v130_v7, %v130_v7  ;;  %v94_v12 = vmul.f32 %v131_v8, %v131_v8 }
  0x3c   :  { %v99_v13 = vmul.f32 %v83_v4, %v83_v4  ;;  %v100_v14 = vmul.f32 %v84_v6, %v84_v6  ;;  %p213_p13 = por %p212_p12, %p211_p11 }
  0x3d   :  { %v91_v15 = vmul.f32 %v89_v9, %v89_v9  ;;  %v92_v16 = vmul.f32 %v90_v10, %v90_v10  ;;  %v95_v17 = vmul.f32 0.8, %v93_v11  ;;  %v96_v18 = vmul.f32 0.8, %v94_v12 }
  0x3e   :  { %p214_p0 = pnand %p213_p13, %p207_p10 }
  0x3f   :  { %v97_v19 = vadd.f32 %v95_v17, %v91_v15  ;;  %v98_v20 = vadd.f32 %v96_v18, %v92_v16 }
  0x41   :  { %v101_v21 = vmul.f32 %v99_v13, %v97_v19  ;;  %v102_v22 = vmul.f32 %v100_v14, %v98_v20 }
  0x43   :  { %v104_v23 = vadd.f32 %v102_v22, %v101_v21 }
  0x45   :  { %111 = vst [vmem:[#allocation9] sm:$0xff] %v104_v23 }
  0x46   :  { %217 = shalt.err (!%p214_p0)
}
  0x47   :  { %s218_s27 = scalar_lea.hbm %s320_s3, 128 }
  0x48   :  { %p219_p1 = scmp.ne.s32.totalorder %s320_s3, %s218_s27  ;;  %p222_p2 = scmp.lt.u32.totalorder %s218_s27, %s320_s3 }
  0x4a   :  { %p224_p3 = pnand %p222_p2, %p219_p1 }
  0x4c   :  { %227 = shalt.err (!%p224_p3)
}
  0x4d   :  { %121 = dma.vmem_to_hbm [thread:$0]  %s119_s23, 128, %s320_s3, [#allocation5]  }
  0x4e   :  { %232 = dma.done.wait [#allocation5], 128  }
  0x4f   :  { %233 = vsyncadd [#allocation5], 4294967168 }
  0x50   :  { %125 = vsyncpa [#allocation4], 1 }
  0x51   :  { %126 = vsyncpa [#allocation7], 1 }
  0x52   :  { %127 = vsyncpa [#allocation5], 1 }

</bundles_post_ra>
